<compile_context>
chip_gen: v7x
topology: tpu7x:2x2x1
jax: 0.10.0
libtpu: 0.0.40
codegen_flags: <defaults>
</compile_context>

<pallas_src>
import functools

import jax
import jax.numpy as jnp
from jax import lax
from jax.experimental import pallas as pl
from jax.experimental.pallas import tpu as pltpu

_MIB = 1024 * 1024
_LANES = 128


def _round_up(x, m):
    return (x + m - 1) // m * m


def _vmem_capacity_bytes():
    """Physical VMEM per TensorCore; conservative fallback if query fails."""
    try:
        info = pltpu.get_tpu_info()
        for name in ("vmem_capacity_bytes", "vmem_size_bytes", "vmem_bytes"):
            cap = getattr(info, name, None)
            if cap:
                return int(cap)
    except Exception:
        pass
    return 64 * _MIB  # assume the smallest (v7x)


def _vmem_plan():
    cap = _vmem_capacity_bytes()
    if cap >= 100 * _MIB:          # v5e / v6e: 128 MiB physical
        vmem_limit = 64 * _MIB
    else:                          # v7x: 64 MiB physical per TC
        vmem_limit = 48 * _MIB
    tile_budget = vmem_limit - 8 * _MIB   # headroom: compiler scratch, outputs
    return vmem_limit, tile_budget


def _sublane_multiple(itemsize):
    return {4: 8, 2: 16, 1: 32}.get(itemsize, 8)


def _pick_tile_b(batch, num_classes, itemsize, transposed, tile_budget):
    """Largest batch tile that fits the VMEM budget (incl. f32 temporaries)."""
    if transposed:
        # (C, TB) layout: classes on sublanes, batch on lanes.
        crows = _round_up(num_classes, 8)
        per_sample = (2 * crows * itemsize       # double-buffered logits column
                      + 3 * crows * 4            # ~3 f32-tile elementwise temps
                      + 2 * 4 + 4)               # targets (int32, 2 bufs) + out
        multiple = _LANES                        # TB sits on lanes
    else:
        # (TB, C) layout: batch on sublanes, classes on lanes (padded to 128).
        cpad = _round_up(num_classes, _LANES)
        per_sample = (2 * cpad * itemsize
                      + 3 * cpad * 4
                      + 2 * 4 * _LANES           # (TB,1) i32 targets pad to 128 lanes
                      + 4 * _LANES)              # (TB,1) f32 output padding
        multiple = _sublane_multiple(itemsize)
    tb = tile_budget // max(per_sample, 1)
    tb = max(multiple, (tb // multiple) * multiple)
    if tb >= batch:
        return batch                             # full-dim block is always legal
    return tb


# ---------------------------------------------------------------------------
# Per-sample focal math (two layouts).
# ---------------------------------------------------------------------------

def _focal_from_ce(ce, alpha, gamma):
    pt = jnp.exp(-ce)
    d = jnp.maximum(1.0 - pt, 0.0)               # clamp tiny rounding negatives
    if gamma == 2.0:
        w = d * d                                # one VPU mul, no EUP pow
    elif gamma == 1.0:
        w = d
    else:
        w = jnp.power(d, jnp.float32(gamma))
    return (alpha * w) * ce


def _focal_rows(logits, targets_col, alpha, gamma):
    """'rows' layout: logits (TB, C) native dtype, targets (TB, 1) i32 -> (TB, 1) f32."""
    tb, c = logits.shape
    m = jnp.max(logits, axis=-1, keepdims=True)                       # (TB,1) native
    e = jnp.exp((logits - m).astype(jnp.float32))                     # f32 exp chain
    lse = m.astype(jnp.float32) + jnp.log(jnp.sum(e, axis=-1, keepdims=True))
    class_ids = lax.broadcasted_iota(jnp.int32, (tb, c), 1)
    tgt = jnp.sum(jnp.where(class_ids == targets_col, logits, jnp.zeros_like(logits)),
                  axis=-1, keepdims=True).astype(jnp.float32)         # (TB,1)
    return _focal_from_ce(lse - tgt, alpha, gamma)


def _focal_cols(logits, targets_row, alpha, gamma):
    """'cols' layout: logits (C, TB) native dtype, targets (1, TB) i32 -> (1, TB) f32."""
    c, tb = logits.shape
    m = jnp.max(logits, axis=0, keepdims=True)                        # (1,TB) native
    e = jnp.exp((logits - m).astype(jnp.float32))
    lse = m.astype(jnp.float32) + jnp.log(jnp.sum(e, axis=0, keepdims=True))
    class_ids = lax.broadcasted_iota(jnp.int32, (c, tb), 0)
    tgt = jnp.sum(jnp.where(class_ids == targets_row, logits, jnp.zeros_like(logits)),
                  axis=0, keepdims=True).astype(jnp.float32)          # (1,TB)
    return _focal_from_ce(lse - tgt, alpha, gamma)


# ---------------------------------------------------------------------------
# Kernels.  All tiles are independent ("parallel"): the reduction kernels emit
# per-tile partial sums broadcast across a lane-dense (1,128) output block.
# ---------------------------------------------------------------------------

def _sum_kernel_rows(logits_ref, targets_ref, out_ref, *, batch, alpha, gamma):
    i = pl.program_id(0)
    tb = logits_ref.shape[0]
    focal = _focal_rows(logits_ref[...], targets_ref[...], alpha, gamma)   # (TB,1)
    row_ids = i * tb + lax.broadcasted_iota(jnp.int32, focal.shape, 0)
    focal = jnp.where(row_ids < batch, focal, 0.0)                         # mask ragged tail
    s = jnp.sum(focal, axis=0, keepdims=True)                              # (1,1)
    out_ref[...] = jnp.broadcast_to(s, out_ref.shape)


def _sum_kernel_cols(logits_ref, targets_ref, out_ref, *, batch, alpha, gamma):
    i = pl.program_id(0)
    tb = logits_ref.shape[1]
    focal = _focal_cols(logits_ref[...], targets_ref[...], alpha, gamma)   # (1,TB)
    col_ids = i * tb + lax.broadcasted_iota(jnp.int32, focal.shape, 1)
    focal = jnp.where(col_ids < batch, focal, 0.0)
    s = jnp.sum(focal, axis=1, keepdims=True)                              # (1,1)
    out_ref[...] = jnp.broadcast_to(s, out_ref.shape)


def _none_kernel_rows(logits_ref, targets_ref, out_ref, *, batch, alpha, gamma):
    i = pl.program_id(0)
    tb = logits_ref.shape[0]
    focal = _focal_rows(logits_ref[...], targets_ref[...], alpha, gamma)
    row_ids = i * tb + lax.broadcasted_iota(jnp.int32, focal.shape, 0)
    out_ref[...] = jnp.where(row_ids < batch, focal, 0.0)


def _none_kernel_cols(logits_ref, targets_ref, out_ref, *, batch, alpha, gamma):
    i = pl.program_id(0)
    tb = logits_ref.shape[1]
    focal = _focal_cols(logits_ref[...], targets_ref[...], alpha, gamma)
    col_ids = i * tb + lax.broadcasted_iota(jnp.int32, focal.shape, 1)
    out_ref[...] = jnp.where(col_ids < batch, focal, 0.0)


# ---------------------------------------------------------------------------
# Wrapper.
# ---------------------------------------------------------------------------

def focal_loss(logits, targets, alpha=1.0, gamma=2.0, reduction="mean", tile_b=None):
    """Focal loss. logits: (B, C) float; targets: (B,) int.

    Returns a scalar for reduction in ('mean', 'sum'), or a (B,) vector otherwise.
    """
    B, C = logits.shape
    itemsize = jnp.dtype(logits.dtype).itemsize
    vmem_limit, tile_budget = _vmem_plan()
    alpha = float(alpha)
    gamma = float(gamma)

    transposed = C < _LANES                       # small C -> batch on lanes
    multiple = _LANES if transposed else _sublane_multiple(itemsize)

    if tile_b is not None:
        TB = min(int(tile_b), B)
        if TB < B:
            TB = max(multiple, (TB // multiple) * multiple)
    else:
        TB = _pick_tile_b(B, C, itemsize, transposed, tile_budget)
    num_tiles = pl.cdiv(B, TB)

    targets_i32 = targets.astype(jnp.int32)

    out_bytes = 4 * B if reduction not in ("mean", "sum") else 4 * num_tiles * _LANES
    cost = pl.CostEstimate(
        flops=int(12 * B * C + 16 * B),
        transcendentals=int(B * C + 3 * B),
        bytes_accessed=int(B * C * itemsize + 4 * B + out_bytes),
    )
    compiler_params = pltpu.CompilerParams(
        dimension_semantics=("parallel",),
        vmem_limit_bytes=int(vmem_limit),
    )

    if transposed:
        # Wrapper-side layout plumbing: batch -> lanes.
        logits_in = logits.T                                  # (C, B)
        targets_in = targets_i32.reshape(1, B)                # (1, B) lane row
        logits_spec = pl.BlockSpec((C, TB), lambda i: (0, i))
        targets_spec = pl.BlockSpec((1, TB), lambda i: (0, i))
        none_out_shape = jax.ShapeDtypeStruct((1, B), jnp.float32)
        none_out_spec = pl.BlockSpec((1, TB), lambda i: (0, i))
        sum_kernel, none_kernel = _sum_kernel_cols, _none_kernel_cols
    else:
        logits_in = logits                                    # (B, C)
        targets_in = targets_i32.reshape(B, 1)
        logits_spec = pl.BlockSpec((TB, C), lambda i: (i, 0))
        targets_spec = pl.BlockSpec((TB, 1), lambda i: (i, 0))
        none_out_shape = jax.ShapeDtypeStruct((B, 1), jnp.float32)
        none_out_spec = pl.BlockSpec((TB, 1), lambda i: (i, 0))
        sum_kernel, none_kernel = _sum_kernel_rows, _none_kernel_rows

    if reduction in ("mean", "sum"):
        # Per-tile partial sums, lane-dense (1,128) block each, fully parallel.
        partial = pl.pallas_call(
            functools.partial(sum_kernel, batch=B, alpha=alpha, gamma=gamma),
            out_shape=jax.ShapeDtypeStruct((1, num_tiles * _LANES), jnp.float32),
            grid_spec=pltpu.PrefetchScalarGridSpec(
                num_scalar_prefetch=0,
                grid=(num_tiles,),
                in_specs=[logits_spec, targets_spec],
                out_specs=pl.BlockSpec((1, _LANES), lambda i: (0, i)),
            ),
            compiler_params=compiler_params,
            cost_estimate=cost,
        )(logits_in, targets_in)
        per_tile = partial.reshape(num_tiles, _LANES)[:, 0]   # lanes are duplicates
        total = jnp.sum(per_tile)
        if reduction == "mean":
            total = total / jnp.float32(B)                    # global B, once
        return total

    # reduction == 'none'
    per_sample = pl.pallas_call(
        functools.partial(none_kernel, batch=B, alpha=alpha, gamma=gamma),
        out_shape=none_out_shape,
        grid_spec=pltpu.PrefetchScalarGridSpec(
            num_scalar_prefetch=0,
            grid=(num_tiles,),
            in_specs=[logits_spec, targets_spec],
            out_specs=none_out_spec,
        ),
        compiler_params=compiler_params,
        cost_estimate=cost,
    )(logits_in, targets_in)
    return per_sample.reshape(B) if transposed else per_sample[:, 0]


# ---------------------------------------------------------------------------
# Pure-JAX reference + self-test.
# ---------------------------------------------------------------------------

def _reference_focal_loss(logits, targets, alpha=1.0, gamma=2.0, reduction="none"):
    logits = logits.astype(jnp.float32)
    logp = jax.nn.log_softmax(logits, axis=-1)
    ce = -jnp.take_along_axis(logp, targets[:, None].astype(jnp.int32), axis=-1)[:, 0]
    pt = jnp.exp(-ce)
    focal = alpha * (1.0 - pt) ** gamma * ce
    if reduction == "mean":
        return focal.mean()
    if reduction == "sum":
        return focal.sum()
    return focal


if __name__ == "__main__":
    key = jax.random.PRNGKey(0)
    k1, k2, k3, k4, k5, k6 = jax.random.split(key, 6)

    # 1) Module-typical small shapes: C=16 < 128 -> transposed batch-on-lanes path.
    B, C = 8, 16
    logits = jax.random.normal(k1, (B, C), dtype=jnp.float32)
    targets = jax.random.randint(k2, (B,), 0, C, dtype=jnp.int32)

    out_mean = jax.block_until_ready(focal_loss(logits, targets, reduction="mean"))
    out_sum = jax.block_until_ready(focal_loss(logits, targets, reduction="sum"))
    out_none = jax.block_until_ready(focal_loss(logits, targets, reduction="none"))

    ref_none = _reference_focal_loss(logits, targets, reduction="none")
    assert jnp.allclose(out_none, ref_none, atol=1e-5, rtol=1e-5)
    assert jnp.allclose(out_mean, ref_none.mean(), atol=1e-5, rtol=1e-5)
    assert jnp.allclose(out_sum, ref_none.sum(), atol=1e-5, rtol=1e-5)

    # 2) Large-C path (C >= 128), multi-tile with ragged last tile.
    B2, C2, TB2 = 300, 256, 128
    logits2 = jax.random.normal(k3, (B2, C2), dtype=jnp.float32)
    targets2 = jax.random.randint(k4, (B2,), 0, C2, dtype=jnp.int32)
    out2_mean = jax.block_until_ready(
        focal_loss(logits2, targets2, reduction="mean", tile_b=TB2))
    out2_none = jax.block_until_ready(
        focal_loss(logits2, targets2, reduction="none", tile_b=TB2))
    ref2_none = _reference_focal_loss(logits2, targets2, reduction="none")
    assert jnp.allclose(out2_none, ref2_none, atol=1e-5, rtol=1e-5)
    assert jnp.allclose(out2_mean, ref2_none.mean(), atol=1e-5, rtol=1e-5)

    # 3) Small-C transposed path, multi-tile with ragged last tile.
    B3, C3, TB3 = 300, 16, 128
    logits3 = jax.random.normal(k5, (B3, C3), dtype=jnp.float32)
    targets3 = jax.random.randint(k6, (B3,), 0, C3, dtype=jnp.int32)
    out3_sum = jax.block_until_ready(
        focal_loss(logits3, targets3, reduction="sum", tile_b=TB3))
    out3_none = jax.block_until_ready(
        focal_loss(logits3, targets3, reduction="none", tile_b=TB3))
    ref3_none = _reference_focal_loss(logits3, targets3, reduction="none")
    assert jnp.allclose(out3_none, ref3_none, atol=1e-5, rtol=1e-5)
    assert jnp.allclose(out3_sum, ref3_none.sum(), atol=1e-4, rtol=1e-5)

    print("KERNEL_OK")
</pallas_src>

<mosaic_0001>
module attributes {stable_mosaic.version = 11 : i64} {
  func.func @_sum_kernel_cols(%arg0: i32, %arg1: memref<16x8xf32, #tpu.memory_space<vmem>>, %arg2: memref<1x8xi32, #tpu.memory_space<vmem>>, %arg3: memref<1x128xf32, #tpu.memory_space<vmem>>) attributes {dimension_semantics = [#tpu.dimension_semantics<parallel>], iteration_bounds = array<i64: 1>, scalar_prefetch = 0 : i64, scratch_operands = 0 : i64, tpu.core_type = #tpu.core_type<tc>, window_params = [{transform_indices = @transform_0, window_bounds = array<i64: 16, 8>}, {transform_indices = @transform_1, window_bounds = array<i64: 1, 8>}, {transform_indices = @transform_2, window_bounds = array<i64: 1, 128>}]} {
    %c0 = arith.constant 0 : index
    %c0_0 = arith.constant 0 : index
    %0 = vector.load %arg1[%c0, %c0_0] : memref<16x8xf32, #tpu.memory_space<vmem>>, vector<16x8xf32>
    %c0_1 = arith.constant 0 : index
    %c0_2 = arith.constant 0 : index
    %1 = vector.load %arg2[%c0_1, %c0_2] : memref<1x8xi32, #tpu.memory_space<vmem>>, vector<1x8xi32>
    %cst = arith.constant dense<0xFF800000> : vector<8xf32>
    %2 = vector.multi_reduction <maximumf>, %0, %cst [0] : vector<16x8xf32> to vector<8xf32>
    %3 = vector.shape_cast %2 : vector<8xf32> to vector<1x8xf32>
    %4 = vector.broadcast %3 : vector<1x8xf32> to vector<16x8xf32>
    %5 = arith.subf %0, %4 : vector<16x8xf32>
    %6 = math.exp %5 : vector<16x8xf32>
    %cst_3 = arith.constant dense<0.000000e+00> : vector<8xf32>
    %7 = vector.multi_reduction <add>, %6, %cst_3 [0] : vector<16x8xf32> to vector<8xf32>
    %8 = vector.shape_cast %7 : vector<8xf32> to vector<1x8xf32>
    %9 = math.log %8 : vector<1x8xf32>
    %10 = arith.addf %3, %9 : vector<1x8xf32>
    %11 = tpu.iota {dimensions = array<i32: 0>} : vector<16x8xi32>
    %12 = vector.broadcast %1 : vector<1x8xi32> to vector<16x8xi32>
    %13 = arith.cmpi eq, %11, %12 : vector<16x8xi32>
    %cst_4 = arith.constant 0.000000e+00 : f32
    %14 = vector.broadcast %cst_4 : f32 to vector<16x8xf32>
    %15 = arith.select %13, %0, %14 : vector<16x8xi1>, vector<16x8xf32>
    %cst_5 = arith.constant dense<0.000000e+00> : vector<8xf32>
    %16 = vector.multi_reduction <add>, %15, %cst_5 [0] : vector<16x8xf32> to vector<8xf32>
    %17 = vector.shape_cast %16 : vector<8xf32> to vector<1x8xf32>
    %18 = arith.subf %10, %17 : vector<1x8xf32>
    %cst_6 = arith.constant 0.000000e+00 : f32
    %19 = vector.broadcast %cst_6 : f32 to vector<1x8xf32>
    %20 = arith.subf %19, %18 : vector<1x8xf32>
    %21 = math.exp %20 : vector<1x8xf32>
    %cst_7 = arith.constant 1.000000e+00 : f32
    %22 = vector.broadcast %cst_7 : f32 to vector<1x8xf32>
    %23 = arith.subf %22, %21 : vector<1x8xf32>
    %cst_8 = arith.constant 0.000000e+00 : f32
    %24 = vector.broadcast %cst_8 : f32 to vector<1x8xf32>
    %25 = arith.maximumf %23, %24 : vector<1x8xf32>
    %26 = arith.mulf %25, %25 : vector<1x8xf32>
    %cst_9 = arith.constant 1.000000e+00 : f32
    %27 = vector.broadcast %cst_9 : f32 to vector<1x8xf32>
    %28 = arith.mulf %27, %26 : vector<1x8xf32>
    %29 = arith.mulf %28, %18 : vector<1x8xf32>
    %c8_i32 = arith.constant 8 : i32
    %30 = arith.muli %arg0, %c8_i32 : i32
    %31 = tpu.iota {dimensions = array<i32: 1>} : vector<1x8xi32>
    %32 = vector.broadcast %30 : i32 to vector<1x8xi32>
    %33 = arith.addi %32, %31 : vector<1x8xi32>
    %c8_i32_10 = arith.constant 8 : i32
    %34 = vector.broadcast %c8_i32_10 : i32 to vector<1x8xi32>
    %35 = arith.cmpi slt, %33, %34 : vector<1x8xi32>
    %cst_11 = arith.constant 0.000000e+00 : f32
    %36 = vector.broadcast %cst_11 : f32 to vector<1x8xf32>
    %37 = arith.select %35, %29, %36 : vector<1x8xi1>, vector<1x8xf32>
    %cst_12 = arith.constant dense<0.000000e+00> : vector<1xf32>
    %38 = vector.multi_reduction <add>, %37, %cst_12 [1] : vector<1x8xf32> to vector<1xf32>
    %39 = vector.shape_cast %38 : vector<1xf32> to vector<1x1xf32>
    %40 = vector.shape_cast %39 : vector<1x1xf32> to vector<1x1xf32>
    %41 = vector.broadcast %40 : vector<1x1xf32> to vector<1x128xf32>
    %c0_13 = arith.constant 0 : index
    %c0_14 = arith.constant 0 : index
    %42 = vector.load %arg3[%c0_13, %c0_14] : memref<1x128xf32, #tpu.memory_space<vmem>>, vector<1x128xf32>
    tpu.vector_store %arg3[%c0_13, %c0_14], %41 {strides = array<i32>} : memref<1x128xf32, #tpu.memory_space<vmem>>, vector<1x128xf32>,
    return
  }
  func.func @transform_0(%arg0: i32) -> (i32, i32) {
    %c0_i32 = arith.constant 0 : i32
    %c0_i32_0 = arith.constant 0 : i32
    return %c0_i32, %arg0 : i32, i32
  }
  func.func @transform_1(%arg0: i32) -> (i32, i32) {
    %c0_i32 = arith.constant 0 : i32
    %c0_i32_0 = arith.constant 0 : i32
    return %c0_i32, %arg0 : i32, i32
  }
  func.func @transform_2(%arg0: i32) -> (i32, i32) {
    %c0_i32 = arith.constant 0 : i32
    %c0_i32_0 = arith.constant 0 : i32
    return %c0_i32, %arg0 : i32, i32
  }
}

</mosaic_0001>

<bundles_post_ra>
// kernel: tpu_custom_call.1
= control target key start
LH: loop header
LB: loop body
LE: loop exit
PB: predicated region body
PF: predicated region fallthrough
CT: control target
= control target key end

     0   :  { %vm15_vm0 = vcmask 64512   ;;  %s174_s0 = inlined_call_operand.vmem [shape: f32[16,8], index: 0, kind: input, shape index: {}]   ;;  %s175_s1 = inlined_call_operand.vmem [shape: s32[1,8], index: 1, kind: input, shape index: {}]   ;;  %s176_s2 = inlined_call_operand.hbm [shape: f32[1,128], index: 2, kind: output, shape index: {}]  }
   0x1   :  { %v12_v0 = vld [vmem:[%s174_s0] sm:$0xff]  ;;  %v13_v1 = vld [vmem:[%s174_s0 + $0x8] sm:$0xff] }
   0x2   :  { %v16_v2 = vsel %vm15_vm0, %v12_v0, -inf  ;;  %v17_v3 = vsel %vm15_vm0, %v13_v1, -inf }
   0x3   :  { %7 = vsyncpa [#allocation3], 0  ;;  %v18_v4 = vmax.f32 %v16_v2, %v17_v3  ;;  %v43_v10 = vlaneseq  ;;  %v96_v18 = vld [vmem:[%s175_s1] ss:$0 sm:$0xff]  ;;  %s130_s1 = smov [#allocation2]  }
   0x4   :  { %s88_s14 = sshll.u32 %s130_s1, 4  ;;  %s89_s14 = int_to_ptr.vmem [resolvable:$true] %s88_s14 }
   0x5   :  { %v19_v5 = vrot.slane %v18_v4, 4  ;;  %v44_v14 = vshrl.u32 %v43_v10, 7  ;;  %v73_v49 = vand.u32 127, %v43_v10  ;;  %s106_s15 = scalar_lea.vmem %s89_s14, 16  ;;  %s110_s16 = scalar_lea.vmem %s89_s14, 32 }
   0x6   :  { %p107_p0 = scmp.ne.s32.totalorder %s89_s14, %s106_s15  ;;  %p111_p1 = scmp.lt.s32.totalorder %s89_s14, %s89_s14 }
   0x7   :  { %v20_v6 = vmax.f32 %v18_v4, %v19_v5  ;;  %v45_v17 = vadd.s32 8, %v44_v14  ;;  %vm50_vm1 = vcmp.eq.s32.totalorder %v44_v14, %v96_v18  ;;  %vm76_vm3 = vcmp.lt.s32.totalorder %v73_v49, 8  ;;  %p112_p2 = scmp.lt.s32.totalorder %s110_s16, %s106_s15 }
   0x8   :  { %v52_v19 = vsel %vm50_vm1, %v12_v0, 0.0 }
   0x9   :  { %v21_v7 = vrot.slane %v20_v6, 2  ;;  %vm51_vm2 = vcmp.eq.s32.totalorder %v45_v17, %v96_v18  ;;  %v54_v24 = vsel %vm15_vm0, %v52_v19, 0.0  ;;  %p113_p3 = por %p112_p2, %p111_p1 }
   0xa   :  { %v53_v20 = vsel %vm51_vm2, %v13_v1, 0.0 }
   0xb   :  { %v22_v8 = vmax.f32 %v20_v6, %v21_v7  ;;  %v55_v25 = vsel %vm15_vm0, %v53_v20, 0.0  ;;  %p114_p4 = pnand %p113_p3, %p107_p0 }
   0xc   :  { %v56_v28 = vadd.f32 %v55_v25, %v54_v24 }
   0xd   :  { %v23_v9 = vrot.slane %v22_v8, 1 }
   0xe   :  { %v57_v31 = vrot.slane %v56_v28, 4 }
   0xf   :  { %v24_v11 = vmax.f32 %v22_v8, %v23_v9 }
  0x10   :  { %v58_v34 = vadd.f32 %v57_v31, %v56_v28 }
  0x11   :  { %v25_v12 = vsub.f32 %v12_v0, %v24_v11  ;;  %v26_v13 = vsub.f32 %v13_v1, %v24_v11 }
  0x12   :  { %v59_v37 = vrot.slane %v58_v34, 2 }
  0x13   :  { %v27_v15 = vmul.f32 1.442695, %v25_v12  ;;  %v29_v16 = vmul.f32 1.442695, %v26_v13 }
  0x14   :  { %v60_v38 = vadd.f32 %v59_v37, %v58_v34 }
  0x15   :  { %98 = vpow2.f32 %v27_v15 }
  0x16   :  { %100 = vpow2.f32 %v29_v16  ;;  %v61_v39 = vrot.slane %v60_v38, 1 }
  0x18   :  { %v62_v42 = vadd.f32 %v61_v39, %v60_v38 }
  0x1f   :  { %v99_v21 = vpop.eup %98 }
  0x20   :  { %v101_v22 = vpop.eup %100  ;;  %v31_v23 = vsel %vm15_vm0, %v99_v21, 0.0 }
  0x21   :  { %v32_v26 = vsel %vm15_vm0, %v101_v22, 0.0 }
  0x22   :  { %v33_v27 = vadd.f32 %v32_v26, %v31_v23 }
  0x24   :  { %v34_v29 = vrot.slane %v33_v27, 4 }
  0x26   :  { %v35_v30 = vadd.f32 %v34_v29, %v33_v27 }
  0x28   :  { %v36_v32 = vrot.slane %v35_v30, 2 }
  0x2a   :  { %v37_v33 = vadd.f32 %v36_v32, %v35_v30 }
  0x2c   :  { %v38_v35 = vrot.slane %v37_v33, 1 }
  0x2e   :  { %v39_v36 = vadd.f32 %v38_v35, %v37_v33 }
  0x30   :  { %102 = vlog2.f32 %v39_v36 }
  0x3a   :  { %v103_v40 = vpop.eup %102 }
  0x3b   :  { %v41_v41 = vmul.f32 0.6931472, %v103_v40 }
  0x3d   :  { %v42_v43 = vadd.f32 %v41_v41, %v24_v11 }
  0x3f   :  { %v63_v44 = vsub.f32 %v42_v43, %v62_v42 }
  0x41   :  { %v64_v45 = vsub.f32 0.0, %v63_v44 }
  0x43   :  { %v65_v46 = vmul.f32 1.442695, %v64_v45 }
  0x45   :  { %104 = vpow2.f32 %v65_v46 }
  0x4f   :  { %v105_v47 = vpop.eup %104 }
  0x50   :  { %v67_v48 = vsub.f32 1.0, %v105_v47 }
  0x52   :  { %v68_v50 = vmax.f32 %v67_v48, 0.0 }
  0x54   :  { %v69_v51 = vmul.f32 %v68_v50, %v68_v50 }
  0x56   :  { %v70_v52 = vmul.f32 %v69_v51, %v63_v44 }
  0x58   :  { %v77_v53 = vsel %vm76_vm3, %v70_v52, 0.0 }
  0x59   :  { %v78_v54 = vsel %vm15_vm0, %v77_v53, 0.0 }
  0x5a   :  { %79 = vadd.xlane.f32.xlu0 %v78_v54 }
  0xe7   :  { %v80_v55 = vpop.xlane.xlu0 %79 }
  0xe8   :  { %81 = vst [vmem:[#allocation2] sm:$0x1] %v80_v55 }
  0xe9   :  { %117 = shalt.err (!%p114_p4)
}
  0xea   :  { %s118_s19 = scalar_lea.hbm %s176_s2, 16 }
  0xeb   :  { %p119_p5 = scmp.ne.s32.totalorder %s176_s2, %s118_s19  ;;  %p122_p6 = scmp.lt.u32.totalorder %s118_s19, %s176_s2 }
  0xed   :  { %p124_p7 = pnand %p122_p6, %p119_p5 }
  0xef   :  { %127 = shalt.err (!%p124_p7)
}
  0xf0   :  { %91 = dma.vmem_to_hbm [thread:$0]  %s89_s14, 16, %s176_s2, [#allocation3]  }
  0xf1   :  { %128 = dma.done.wait [#allocation3], 16  }
  0xf2   :  { %129 = vsyncadd [#allocation3], 4294967280 }
  0xf3   :  { %95 = vsyncpa [#allocation3], 1 }

</bundles_post_ra>
